<compile_context>
chip_gen: v5e
topology: v5e:2x2
jax: 0.10.0
libtpu: 0.0.40
codegen_flags: <defaults>
</compile_context>

<pallas_src>
import math

import jax
import jax.numpy as jnp
from jax.experimental import pallas as pl
from jax.experimental.pallas import tpu as pltpu


_MAX_TILE_BYTES = 4 << 20      # per-block cap: 4 buffers x 4 MiB = 16 MiB VMEM
_VMEM_LIMIT_BYTES = 32 << 20   # scoped VMEM request; <= physical on v5e/v6e/v7x
_COLS_CANDIDATES = (4096, 3584, 3072, 2560, 2048, 1536, 1024, 768, 512, 384, 256, 128)


def _copy_kernel(x_ref, o_ref):
    # Identity copy of the current (tile_r, cols) block — the only data
    # movement aten.view can imply.
    o_ref[...] = x_ref[...]


def _pick_layout(total, itemsize):
    """Pick a padding-free (rows, cols, tile_rows) 2-D layout, or None."""
    cols = 0
    for c in _COLS_CANDIDATES:
        if total % c == 0:
            cols = c
            break
    if cols == 0:
        return None
    rows = total // cols
    row_bytes = cols * itemsize
    cap_rows = max(1, _MAX_TILE_BYTES // row_bytes)

    # Largest divisor of `rows` that is a multiple of 8 and <= cap_rows.
    tile_r = 0
    r = min(cap_rows, rows)
    r -= r % 8
    while r >= 8:
        if rows % r == 0:
            tile_r = r
            break
        r -= 8
    if tile_r == 0:
        # No multiple-of-8 row divisor: the only legal block spans all rows
        # (block dim == full array dim).  Accept it only while it stays small.
        if rows * row_bytes <= 4 * _MAX_TILE_BYTES:
            tile_r = rows
        else:
            return None

    # Prefer >= 2 grid steps so v7x's two TensorCores can each take half.
    if rows // tile_r == 1 and tile_r % 16 == 0:
        tile_r //= 2
    return rows, cols, tile_r


def _pallas_copy_2d(x2d, tile_r):
    """Copy a (R, cols) array through VMEM with lane-dense (tile_r, cols) blocks."""
    R, C = x2d.shape
    nbytes = x2d.size * x2d.dtype.itemsize
    return pl.pallas_call(
        _copy_kernel,
        out_shape=jax.ShapeDtypeStruct((R, C), x2d.dtype),
        grid_spec=pltpu.PrefetchScalarGridSpec(
            num_scalar_prefetch=0,
            grid=(R // tile_r,),
            in_specs=[pl.BlockSpec((tile_r, C), lambda i: (i, 0))],
            out_specs=pl.BlockSpec((tile_r, C), lambda i: (i, 0)),
        ),
        compiler_params=pltpu.CompilerParams(
            dimension_semantics=("parallel",),
            vmem_limit_bytes=_VMEM_LIMIT_BYTES,
        ),
        cost_estimate=pl.CostEstimate(
            flops=0, transcendentals=0, bytes_accessed=2 * nbytes
        ),
    )(x2d)


def aten_view(x, target_shape):
    """Semantics of torch.ops.aten.view.default(x, target_shape).

    Row-major (C-contiguous) element order, identical to PyTorch's view of a
    contiguous tensor.  Supports a single -1 in target_shape.
    """
    total = int(x.size)
    shape = list(target_shape)
    if -1 in shape:
        idx = shape.index(-1)
        known = math.prod(int(s) for j, s in enumerate(shape) if j != idx)
        assert known > 0 and total % known == 0
        shape[idx] = total // known
    shape = tuple(int(s) for s in shape)
    assert math.prod(shape) == total

    itemsize = x.dtype.itemsize
    layout = _pick_layout(total, itemsize)

    if layout is not None:
        # Common case: no padding, no extra HBM traffic beyond 1 read + 1 write.
        rows, cols, tile_r = layout
        y2d = _pallas_copy_2d(x.reshape(rows, cols), tile_r)
        return y2d.reshape(shape)

    # Fallback for element counts with no lane-aligned factorization:
    # one jnp.pad to a multiple of 8*4096 elements, copy, one slice.
    pad_unit = 8 * 4096
    padded = ((total + pad_unit - 1) // pad_unit) * pad_unit
    flat = jnp.pad(x.reshape(-1), (0, padded - total))
    rows, cols, tile_r = _pick_layout(padded, itemsize)
    y2d = _pallas_copy_2d(flat.reshape(rows, cols), tile_r)
    return y2d.reshape(-1)[:total].reshape(shape)


if __name__ == "__main__":
    key = jax.random.PRNGKey(0)
    # Shapes consistent with retinanet head reshapes: (N, A*4, H, W) -> (N, -1, 4)
    x = jax.random.normal(key, (2, 4, 16, 16), dtype=jnp.float32)
    target_shape = (2, -1, 4)   # -> (2, 256, 4)

    y = aten_view(x, target_shape)
    y = jax.block_until_ready(y)

    # Check against the pure-JAX reference (same row-major view semantics).
    ref = x.reshape(2, -1, 4)
    assert y.shape == (2, 256, 4), y.shape
    assert y.dtype == x.dtype
    assert bool(jnp.array_equal(y, ref))

    print("KERNEL_OK")
</pallas_src>

<mosaic_0001>
module attributes {stable_mosaic.version = 11 : i64} {
  func.func @_copy_kernel(%arg0: i32, %arg1: memref<1x2048xf32, #tpu.memory_space<vmem>>, %arg2: memref<1x2048xf32, #tpu.memory_space<vmem>>) attributes {dimension_semantics = [#tpu.dimension_semantics<parallel>], iteration_bounds = array<i64: 1>, scalar_prefetch = 0 : i64, scratch_operands = 0 : i64, tpu.core_type = #tpu.core_type<tc>, window_params = [{transform_indices = @transform_0, window_bounds = array<i64: 1, 2048>}, {transform_indices = @transform_1, window_bounds = array<i64: 1, 2048>}]} {
    %c0 = arith.constant 0 : index
    %c0_0 = arith.constant 0 : index
    %0 = vector.load %arg1[%c0, %c0_0] : memref<1x2048xf32, #tpu.memory_space<vmem>>, vector<1x2048xf32>
    %c0_1 = arith.constant 0 : index
    %c0_2 = arith.constant 0 : index
    %1 = vector.load %arg2[%c0_1, %c0_2] : memref<1x2048xf32, #tpu.memory_space<vmem>>, vector<1x2048xf32>
    tpu.vector_store %arg2[%c0_1, %c0_2], %0 {strides = array<i32>} : memref<1x2048xf32, #tpu.memory_space<vmem>>, vector<1x2048xf32>,
    return
  }
  func.func @transform_0(%arg0: i32) -> (i32, i32) {
    %c0_i32 = arith.constant 0 : i32
    %c0_i32_0 = arith.constant 0 : i32
    return %arg0, %c0_i32 : i32, i32
  }
  func.func @transform_1(%arg0: i32) -> (i32, i32) {
    %c0_i32 = arith.constant 0 : i32
    %c0_i32_0 = arith.constant 0 : i32
    return %arg0, %c0_i32 : i32, i32
  }
}

</mosaic_0001>

<bundles_post_ra>
// kernel: tpu_custom_call.1
= control target key start
LH: loop header
LB: loop body
LE: loop exit
PB: predicated region body
PF: predicated region fallthrough
CT: control target
= control target key end

     0   :  { %6 = vsyncpa [#allocation3], 0  ;;  %s116_s0 = inlined_call_operand.hbm [shape: f32[1,2048], index: 0, kind: input, shape index: {}]   ;;  %s117_s1 = inlined_call_operand.hbm [shape: f32[1,2048], index: 1, kind: output, shape index: {}]  }
   0x1   :  { %7 = vsyncpa [#allocation4], 0  ;;  %s13_s8 = sshll.u32 %s116_s0, 4  ;;  %s98_s9 = smov [#allocation2]   ;;  %s14_s8 = int_to_ptr.hbm [resolvable:$true] %s13_s8 }
   0x2   :  { %s15_s10 = sshll.u32 %s98_s9, 4  ;;  %s16_s10 = int_to_ptr.vmem [resolvable:$true] %s15_s10 }
   0x3   :  { %18 = dma.hbm_to_vmem [thread:$0]  %s14_s8, 256, %s16_s10, [#allocation3]  }
   0x4   :  { %94 = dma.done.wait [#allocation3], 256  }
   0x5   :  { %95 = vsyncadd [#allocation3], 4294967040  ;;  %s99_s11 = smov [#allocation5]   ;;  %s34_s15 = sshll.u32 %s117_s1, 4  ;;  %v23_v0 = vld [vmem:[#allocation2] sm:$0xff]  ;;  %v24_v1 = vld [vmem:[#allocation2 + $0x8] sm:$0xff]  ;;  %s35_s15 = int_to_ptr.hbm [resolvable:$true] %s34_s15 }
   0x6   :  { %s32_s12 = sshll.u32 %s99_s11, 4  ;;  %25 = vst [vmem:[#allocation5] sm:$0xff] %v23_v0  ;;  %s33_s12 = int_to_ptr.vmem [resolvable:$true] %s32_s12 }
   0x7   :  { %26 = vst [vmem:[#allocation5 + $0x8] sm:$0xff] %v24_v1 }
   0x8   :  { %37 = dma.vmem_to_hbm [thread:$0]  %s33_s12, 256, %s35_s15, [#allocation4]  }
   0x9   :  { %96 = dma.done.wait [#allocation4], 256  }
   0xa   :  { %97 = vsyncadd [#allocation4], 4294967040 }
   0xb   :  { %42 = vsyncpa [#allocation3], 1 }
   0xc   :  { %43 = vsyncpa [#allocation4], 1 }

</bundles_post_ra>
